<compile_context>
chip_gen: v5e
topology: v5e:2x2
jax: 0.10.0
libtpu: 0.0.40
codegen_flags: <defaults>
</compile_context>

<pallas_src>
import functools

import jax
import jax.numpy as jnp
from jax import lax
from jax.experimental import pallas as pl
from jax.experimental.pallas import tpu as pltpu


# Rows of the packed (8, N) per-neuron parameter slab (rows 5..7 are padding
# so the block is sublane-aligned).
_ROW_LOC, _ROW_SPIKE, _ROW_SLAB, _ROW_INVTH, _ROW_KM1 = 0, 1, 2, 3, 4


def _zig_tile(t, p_ref):
    """Elementwise ZIG loss for one (tb, tn) targets tile.

    p_ref rows: 0 loc, 1 log1p(-q)-log(loc), 2 log(q)-k*log(theta)-lgamma(k),
    3 1/theta, 4 k-1.  Each (1, tn) row broadcasts over sublanes.
    """
    loc = p_ref[_ROW_LOC:_ROW_LOC + 1, :]
    spike_c = p_ref[_ROW_SPIKE:_ROW_SPIKE + 1, :]
    slab_c = p_ref[_ROW_SLAB:_ROW_SLAB + 1, :]
    inv_theta = p_ref[_ROW_INVTH:_ROW_INVTH + 1, :]
    km1 = p_ref[_ROW_KM1:_ROW_KM1 + 1, :]

    nonzero = t > loc
    # Spike-branch delta forced to 1.0 so log() stays finite; that branch's
    # slab value is discarded by the final select anyway.
    delta = jnp.where(nonzero, t - loc, 1.0)
    slab = slab_c + km1 * jnp.log(delta) - delta * inv_theta
    return -jnp.where(nonzero, slab, spike_c)


def _zig_loss_kernel(t_ref, p_ref, out_ref):
    out_ref[...] = _zig_tile(t_ref[...], p_ref)


def _zig_loss_sum_kernel(t_ref, p_ref, out_ref, *, B, N, tb, tn):
    j = pl.program_id(0)   # neuron-block axis (outer / slow)
    i = pl.program_id(1)   # batch-block axis (inner / fast)

    @pl.when((j == 0) & (i == 0))
    def _():
        out_ref[0, 0] = jnp.float32(0.0)

    loss = _zig_tile(t_ref[...], p_ref)
    # Mask ragged-block padding (reads past B/N are undefined garbage).
    rows = i * tb + lax.broadcasted_iota(jnp.int32, (tb, tn), 0)
    cols = j * tn + lax.broadcasted_iota(jnp.int32, (tb, tn), 1)
    valid = (rows < B) & (cols < N)
    out_ref[0, 0] += jnp.sum(jnp.where(valid, loss, 0.0))


def _round_up(x, m):
    return ((x + m - 1) // m) * m


def _choose_tiles(B, N, itemsize):
    try:
        vmem_bytes = pltpu.get_tpu_info().vmem_capacity_bytes
    except Exception:
        vmem_bytes = 64 << 20  # conservative (v7x-sized) fallback
    # ~8 MiB blocks on 128-MiB-VMEM parts (v5e/v6e), ~4 MiB on 64-MiB parts (v7x).
    block_budget = (8 << 20) if vmem_bytes >= (100 << 20) else (4 << 20)

    tn = min(_round_up(N, 128), 2048)
    tb_cap = max(8, (block_budget // (tn * itemsize)) // 8 * 8)
    tb = min(_round_up(B, 8), tb_cap, 2048)

    # Keep >= 2 grid steps so megacore (v7x) has something to shard.
    if pl.cdiv(B, tb) * pl.cdiv(N, tn) < 2:
        if tb >= 16:
            tb = _round_up(pl.cdiv(B, 2), 8)
        elif tn >= 256:
            tn = _round_up(pl.cdiv(N, 2), 128)
    return tb, tn


def zig_loss(targets, theta, k, loc, q, *, reduction="none"):
    """Pallas ZIGLoss forward.

    targets: (B, N).  theta/k/loc/q: per-neuron parameters broadcastable to
    (N,).  reduction="none" returns the (B, N) loss (module semantics);
    "sum"/"mean" fuse the reduction into the kernel (halves HBM traffic).
    """
    targets = jnp.asarray(targets)
    if not jnp.issubdtype(targets.dtype, jnp.floating):
        targets = targets.astype(jnp.float32)
    B, N = targets.shape
    dt = targets.dtype

    def as_param(p):
        p = jnp.asarray(p, dt).reshape(-1)
        assert p.shape[0] in (1, N), "parameters must be per-neuron (broadcast over batch)"
        return jnp.broadcast_to(p, (N,))

    theta_p, k_p, loc_p, q_p = map(as_param, (theta, k, loc, q))

    # Hoist all parameter-only math out of the hot path (computed once, (N,)).
    spike_const = jnp.log1p(-q_p) - jnp.log(loc_p)
    slab_const = (jnp.log(q_p) - k_p * jnp.log(theta_p)
                  - jax.scipy.special.gammaln(k_p).astype(dt))
    inv_theta = 1.0 / theta_p
    km1 = k_p - 1.0
    zeros = jnp.zeros_like(loc_p)
    # Single sublane-aligned (8, N) parameter slab -> one DMA per neuron block.
    params = jnp.stack(
        [loc_p, spike_const, slab_const, inv_theta, km1, zeros, zeros, zeros],
        axis=0)

    tb, tn = _choose_tiles(B, N, dt.itemsize)
    grid = (pl.cdiv(N, tn), pl.cdiv(B, tb))   # neuron blocks outer, batch inner

    targets_spec = pl.BlockSpec((tb, tn), lambda j, i: (i, j))
    params_spec = pl.BlockSpec((8, tn), lambda j, i: (0, j))

    block_bytes = tb * tn * dt.itemsize
    vmem_limit = max(32 << 20, int(4 * block_bytes * 1.25) + (2 << 20))

    if reduction == "none":
        return pl.pallas_call(
            _zig_loss_kernel,
            out_shape=jax.ShapeDtypeStruct((B, N), dt),
            grid_spec=pltpu.PrefetchScalarGridSpec(
                num_scalar_prefetch=0,
                grid=grid,
                in_specs=[targets_spec, params_spec],
                out_specs=pl.BlockSpec((tb, tn), lambda j, i: (i, j)),
            ),
            compiler_params=pltpu.CompilerParams(
                dimension_semantics=("parallel", "parallel"),
                vmem_limit_bytes=vmem_limit),
        )(targets, params)

    if reduction not in ("sum", "mean"):
        raise ValueError(f"unknown reduction: {reduction!r}")

    kernel = functools.partial(_zig_loss_sum_kernel, B=B, N=N, tb=tb, tn=tn)
    total = pl.pallas_call(
        kernel,
        out_shape=jax.ShapeDtypeStruct((1, 1), jnp.float32),
        grid_spec=pltpu.PrefetchScalarGridSpec(
            num_scalar_prefetch=0,
            grid=grid,
            in_specs=[targets_spec, params_spec],
            out_specs=pl.BlockSpec(memory_space=pltpu.MemorySpace.SMEM),
        ),
        compiler_params=pltpu.CompilerParams(
            dimension_semantics=("arbitrary", "arbitrary"),
            vmem_limit_bytes=vmem_limit),
    )(targets, params)[0, 0]
    if reduction == "mean":
        total = total / (B * N)
    return total.astype(dt)


def zig_loss_ref(targets, theta, k, loc, q):
    """Pure-JAX reference mirroring the PyTorch forward (no requires_grad branch)."""
    zero_mask = (targets <= loc).astype(targets.dtype)
    nonzero_mask = (targets > loc).astype(targets.dtype)
    spike_loss = (jnp.log(1.0 - q) - jnp.log(loc)) * zero_mask
    delta = targets * nonzero_mask - loc * nonzero_mask
    slab_loss = (
        jnp.log(q)
        + (k - 1.0) * jnp.log(delta + 1.0 * zero_mask)
        - delta / theta
        - k * jnp.log(theta)
        - jax.scipy.special.gammaln(k)
    ) * nonzero_mask
    return -(spike_loss + slab_loss)


if __name__ == "__main__":
    def make_inputs(key, B, N):
        k_t, k_theta, k_k, k_loc, k_q = jax.random.split(key, 5)
        # targets: non-negative "spike counts" with plenty of zeros
        targets = jnp.floor(
            jax.random.uniform(k_t, (B, N), jnp.float32, minval=0.0, maxval=4.0))
        theta = jax.nn.softplus(jax.random.normal(k_theta, (1, N), jnp.float32)) + 0.1
        k_par = jax.nn.softplus(jax.random.normal(k_k, (1, N), jnp.float32)) + 0.5
        loc = 0.01 + 0.2 * jax.random.uniform(k_loc, (1, N), jnp.float32)  # 0 < loc < 1
        q = jax.nn.sigmoid(jax.random.normal(k_q, (1, N), jnp.float32))
        return targets, theta, k_par, loc, q

    key1, key2 = jax.random.split(jax.random.PRNGKey(0))

    # Tile-friendly shapes.
    B1, N1 = 256, 384
    t1, th1, k1, l1, q1 = make_inputs(key1, B1, N1)
    out1 = jax.block_until_ready(zig_loss(t1, th1, k1, l1, q1))
    ref1 = zig_loss_ref(t1, th1, k1, l1, q1)
    assert out1.shape == (B1, N1) and out1.dtype == jnp.float32
    assert bool(jnp.allclose(out1, ref1, rtol=1e-4, atol=5e-5)), "mismatch (dense)"

    # Ragged shapes (exercise the cdiv grid / masked last blocks).
    B2, N2 = 100, 200
    t2, th2, k2, l2, q2 = make_inputs(key2, B2, N2)
    out2 = jax.block_until_ready(zig_loss(t2, th2, k2, l2, q2))
    ref2 = zig_loss_ref(t2, th2, k2, l2, q2)
    assert bool(jnp.allclose(out2, ref2, rtol=1e-4, atol=5e-5)), "mismatch (ragged)"

    # Fused reductions (drop the (B, N) writeback stream entirely).
    s1 = jax.block_until_ready(zig_loss(t1, th1, k1, l1, q1, reduction="sum"))
    m2 = jax.block_until_ready(zig_loss(t2, th2, k2, l2, q2, reduction="mean"))
    ref_s1 = float(jnp.sum(ref1))
    ref_m2 = float(jnp.mean(ref2))
    assert abs(float(s1) - ref_s1) <= 1e-3 * (1.0 + abs(ref_s1)), "mismatch (sum)"
    assert abs(float(m2) - ref_m2) <= 1e-3 * (1.0 + abs(ref_m2)), "mismatch (mean)"

    print("KERNEL_OK")
</pallas_src>

<mosaic_0001>
module attributes {stable_mosaic.version = 11 : i64} {
  func.func @_zig_loss_kernel(%arg0: i32, %arg1: i32, %arg2: memref<128x384xf32, #tpu.memory_space<vmem>>, %arg3: memref<8x384xf32, #tpu.memory_space<vmem>>, %arg4: memref<128x384xf32, #tpu.memory_space<vmem>>) attributes {dimension_semantics = [#tpu.dimension_semantics<parallel>, #tpu.dimension_semantics<parallel>], iteration_bounds = array<i64: 1, 2>, scalar_prefetch = 0 : i64, scratch_operands = 0 : i64, tpu.core_type = #tpu.core_type<tc>, window_params = [{transform_indices = @transform_0, window_bounds = array<i64: 128, 384>}, {transform_indices = @transform_1, window_bounds = array<i64: 8, 384>}, {transform_indices = @transform_2, window_bounds = array<i64: 128, 384>}]} {
    %c0 = arith.constant 0 : index
    %c0_0 = arith.constant 0 : index
    %0 = vector.load %arg2[%c0, %c0_0] : memref<128x384xf32, #tpu.memory_space<vmem>>, vector<128x384xf32>
    %c0_1 = arith.constant 0 : index
    %c0_2 = arith.constant 0 : index
    %1 = vector.load %arg3[%c0_1, %c0_2] : memref<8x384xf32, #tpu.memory_space<vmem>>, vector<1x384xf32>
    %c1 = arith.constant 1 : index
    %c0_3 = arith.constant 0 : index
    %2 = vector.load %arg3[%c1, %c0_3] : memref<8x384xf32, #tpu.memory_space<vmem>>, vector<1x384xf32>
    %c2 = arith.constant 2 : index
    %c0_4 = arith.constant 0 : index
    %3 = vector.load %arg3[%c2, %c0_4] : memref<8x384xf32, #tpu.memory_space<vmem>>, vector<1x384xf32>
    %c3 = arith.constant 3 : index
    %c0_5 = arith.constant 0 : index
    %4 = vector.load %arg3[%c3, %c0_5] : memref<8x384xf32, #tpu.memory_space<vmem>>, vector<1x384xf32>
    %c4 = arith.constant 4 : index
    %c0_6 = arith.constant 0 : index
    %5 = vector.load %arg3[%c4, %c0_6] : memref<8x384xf32, #tpu.memory_space<vmem>>, vector<1x384xf32>
    %6 = vector.broadcast %1 : vector<1x384xf32> to vector<128x384xf32>
    %7 = arith.cmpf ogt, %0, %6 : vector<128x384xf32>
    %8 = vector.broadcast %1 : vector<1x384xf32> to vector<128x384xf32>
    %9 = arith.subf %0, %8 : vector<128x384xf32>
    %cst = arith.constant 1.000000e+00 : f32
    %10 = vector.broadcast %cst : f32 to vector<128x384xf32>
    %11 = arith.select %7, %9, %10 : vector<128x384xi1>, vector<128x384xf32>
    %12 = math.log %11 : vector<128x384xf32>
    %13 = vector.broadcast %5 : vector<1x384xf32> to vector<128x384xf32>
    %14 = arith.mulf %13, %12 : vector<128x384xf32>
    %15 = vector.broadcast %3 : vector<1x384xf32> to vector<128x384xf32>
    %16 = arith.addf %15, %14 : vector<128x384xf32>
    %17 = vector.broadcast %4 : vector<1x384xf32> to vector<128x384xf32>
    %18 = arith.mulf %11, %17 : vector<128x384xf32>
    %19 = arith.subf %16, %18 : vector<128x384xf32>
    %20 = vector.shape_cast %2 : vector<1x384xf32> to vector<1x384xf32>
    %21 = vector.broadcast %20 : vector<1x384xf32> to vector<128x384xf32>
    %22 = arith.select %7, %19, %21 : vector<128x384xi1>, vector<128x384xf32>
    %cst_7 = arith.constant 0.000000e+00 : f32
    %23 = vector.broadcast %cst_7 : f32 to vector<128x384xf32>
    %24 = arith.subf %23, %22 : vector<128x384xf32>
    %c0_8 = arith.constant 0 : index
    %c0_9 = arith.constant 0 : index
    %25 = vector.load %arg4[%c0_8, %c0_9] : memref<128x384xf32, #tpu.memory_space<vmem>>, vector<128x384xf32>
    tpu.vector_store %arg4[%c0_8, %c0_9], %24 {strides = array<i32>} : memref<128x384xf32, #tpu.memory_space<vmem>>, vector<128x384xf32>,
    return
  }
  func.func @transform_0(%arg0: i32, %arg1: i32) -> (i32, i32) {
    %c0_i32 = arith.constant 0 : i32
    return %arg1, %arg0 : i32, i32
  }
  func.func @transform_1(%arg0: i32, %arg1: i32) -> (i32, i32) {
    %c0_i32 = arith.constant 0 : i32
    %c0_i32_0 = arith.constant 0 : i32
    return %c0_i32, %arg0 : i32, i32
  }
  func.func @transform_2(%arg0: i32, %arg1: i32) -> (i32, i32) {
    %c0_i32 = arith.constant 0 : i32
    return %arg1, %arg0 : i32, i32
  }
}

</mosaic_0001>

<bundles_post_ra>
// kernel: tpu_custom_call.1
= control target key start
LH: loop header
LB: loop body
LE: loop exit
PB: predicated region body
PF: predicated region fallthrough
CT: control target
= control target key end

     0   :  { %7 = vsyncpa [#allocation3], 0  ;;  %s2472_s0 = inlined_call_operand.hbm [shape: f32[256,384], index: 0, kind: input, shape index: {}]   ;;  %s2473_s1 = inlined_call_operand.hbm [shape: f32[8,384], index: 1, kind: input, shape index: {}]   ;;  %s2474_s2 = inlined_call_operand.hbm [shape: f32[256,384], index: 2, kind: output, shape index: {}]  }
   0x1   :  { %9 = vsyncpa [#allocation3 + $0x1], 0 }
   0x2   :  { %10 = vsyncpa [#allocation6], 0 }
   0x3   :  { %11 = vsyncpa [#allocation4], 0 }
   0x4   :  { %13 = vsyncpa [#allocation4 + $0x1], 0  ;;  %s1357_s9 = smov 0   ;;  %s1359_s10 = smov 0  }
   0x5   :  { %s1361_s11 = smov 0   ;;  %s1363_s12 = smov 0  }
   0x6   :  { %s1365_s13 = smov 0   ;;  %s1367_s14 = smov 0  }
   0x7 LB: > { %s997_s15 = sadd.s32 4294967295, %s1335_s14   ;;  %s998_s16 = sadd.s32 4294967294, %s1335_s14   ;;  %s1335_s14 = sphi %s1367_s14, %s19_s14   ;;  %s1331_s13 = sphi %s1365_s13, %s2486_s13   ;;  %s1327_s12 = sphi %s1363_s12, %s2485_s12   ;;  %s1323_s11 = sphi %s1361_s11, %s2484_s11   ;;  %s1319_s10 = sphi %s1359_s10, %s2483_s10   ;;  %s1315_s9 = sphi %s1357_s9, %s2482_s9  }
   0x8   : > { %s40_s17 = sadd.s32 1, %s1323_s11  ;;  %p47_p0 = scmp.ne.s32.totalorder %s1323_s11, %s1319_s10 }
   0x9   : > { %p48_p1 = scmp.eq.s32.totalorder %s1335_s14, 0  ;;  %p53_p2 = scmp.ne.s32.totalorder %s1319_s10, %s1315_s9 }
   0xa   : > { %p1395_p3 = scmp.eq.s32.totalorder %s997_s15, 0  ;;  %p105_p4 = scmp.eq.s32.totalorder %s997_s15, 1 }
   0xb   : > { %p1399_p5 = por %p48_p1, %p47_p0  ;;  %p111_p6 = scmp.eq.s32.totalorder %s998_s16, 1 }
   0xc   : > { %p1405_p7 = por %p1395_p3, %p53_p2  ;;  %p1409_p8 = por %p105_p4, %p47_p0 }
   0xd   : > { %p1413_p9 = por %p111_p6, %p53_p2  ;;  %p999_p10 = scmp.ge.s32.totalorder %s1335_s14, 1 }
   0xe   : > { %p118_p11 = scmp.lt.s32.totalorder %s1335_s14, 3  ;;  %s133_s25 = sshll.u32 %s2473_s1, 4  ;;  %s134_s25 = int_to_ptr.hbm [resolvable:$true] %s133_s25 }
   0xf   : > { %s1337_s27 = smov [#allocation5]   ;;  %p1001_p13 = scmp.ge.s32.totalorder %s1335_s14, 2 }
  0x10   : > { %p1422_p12 = pnand %p999_p10, %p118_p11  ;;  %s135_s28 = sshll.u32 %s1337_s27, 4  ;;  %s136_s28 = int_to_ptr.vmem [resolvable:$true] %s135_s28 }
  0x11   : > { %p1037_p1 = scmp.lt.s32.totalorder %s1335_s14, 2  ;;  %s28_s30 = sadd.s32 1, %s1331_s13 }
  0x12   : > { %p1024_p0 = pneg %p1422_p12  ;;  %p29_p6 = scmp.ge.s32.totalorder %s28_s30, 2 }
  0x13   : > { %p1434_p4 = pnand %p1037_p1, %p1399_p5  ;;  %s146_s3 = sand.u32 1, %s1323_s11  }
  0x14   : > { %p1025_p2 = pnand %p1024_p0, %p1395_p3  ;;  %s2488_s30 = smov (%p29_p6, %s28_s30), 0 }
  0x15   : > { %s1012_s4 = smul.u32 384, %s146_s3  ;;  %s35_s5 = ssub.s32 %s1331_s13, %s2488_s30 }
  0x16   : > { %1027 = dma.hbm_to_vmem [thread:$0]  (!%p1025_p2), %s134_s25, 384, %s136_s28, [#allocation6]  }
  0x17   : > { %s1013_s6 = smul.u32 384, %s1331_s13  ;;  %p38_p10 = scmp.eq.s32.totalorder %s35_s5, 0 }
  0x18   : > { %s150_s16 = scalar_lea.vmem [#allocation2], %s1012_s4  ;;  %s147_s25 = scalar_lea.sflag [#allocation3], %s146_s3 }
  0x19   : > { %s158_s15 = scalar_lea.hbm %s2472_s0, %s1013_s6  ;;  %s161_s19 = sshll.u32 %s150_s16, 4  ;;  %s162_s19 = int_to_ptr.vmem [resolvable:$true] %s161_s19 }
  0x1a   : > { %s1451_s23 = scalar_select %p38_p10, %s1323_s11, %s40_s17  }
  0x1b   : > { %s159_s24 = sshll.u32 %s158_s15, 4  ;;  %s1338_s27 = smov 384   ;;  %s160_s24 = int_to_ptr.hbm [resolvable:$true] %s159_s24 }
  0x1c   : > { %s1339_s28 = smov 24   ;;  %173 = sbr.rel (%p1422_p12) target bundleno = 189 (0xbd), region = 28 }
  0x1d   : > { %1031 = dma.hbm_to_vmem [thread:$0]  (!%p1434_p4), %s160_s24, 6144, %s162_s19, %s147_s25, %s1338_s27, %s1338_s27, %s1339_s28  }
  0x1e   : > { %s1458_s5 = sand.u32 (!%p1422_p12), 1, %s1319_s10  }
  0x1f   : > { %s1014_s17 = smul.u32 (!%p1422_p12), 384, %s1458_s5  ;;  %s176_s4 = scalar_lea.sflag (!%p1422_p12), [#allocation3], %s1458_s5 }
  0x21   : > { %s1464_s6 = scalar_lea.vmem [#allocation2], %s1014_s17 }
  0x22   : > { %1302 = dma.done.wait (%p1405_p7), %s176_s4, 6144  }
  0x23   : > { %1304 = vsyncadd (%p1405_p7), %s176_s4, 4294961152 }
  0x24   : > { %1306 = dma.done.wait (%p1395_p3), [#allocation6], 384  }
  0x25   : > { %1308 = vsyncadd (%p1395_p3), [#allocation6], 4294966912  ;;  %v1475_v0 = vld [vmem:[%s1464_s6] sm:$0xff]  ;;  %v1486_v10 = vld [vmem:[%s1464_s6 + $0x8] sm:$0xff]  ;;  %s1664_s18 = scalar_lea.vmem [#allocation7], %s1014_s17  ;;  %s1015_s20 = smul.u32 384, %s1327_s12 }
  0x26   : > { %v259_v1 = vld [vmem:[#allocation5] ss:$8 sm:$0x7]  ;;  %v261_v2 = vld [vmem:[#allocation5 + $0x1] ss:$8 sm:$0x7] }
  0x27   : > { %v263_v3 = vld [vmem:[#allocation5 + $0x2] ss:$8 sm:$0x7]  ;;  %v265_v4 = vld [vmem:[#allocation5 + $0x3] ss:$8 sm:$0x7]  ;;  %s894_s29 = scalar_lea.hbm %s2474_s2, %s1015_s20 }
  0x28   : > { %v267_v5 = vld [vmem:[#allocation5 + $0x4] ss:$8 sm:$0x7]  ;;  %v1477_v6 = vperm.slane %v259_v1, 0  ;;  %v1481_v8 = vperm.slane %v263_v3, 0  ;;  %v1483_v9 = vperm.slane %v265_v4, 0 }
  0x29   : > { %v1479_v7 = vperm.slane %v267_v5, 0  ;;  %v1488_v11 = vperm.slane %v261_v2, 0  ;;  %v1490_v12 = vperm.slane %v259_v1, 1  ;;  %v1492_v13 = vperm.slane %v267_v5, 1  ;;  %v1505_v18 = vld [vmem:[%s1464_s6 + $0x10] sm:$0xff]  ;;  %v1516_v22 = vld [vmem:[%s1464_s6 + $0x18] sm:$0xff] }
  0x2a   : > { %v1494_v14 = vperm.slane %v263_v3, 1  ;;  %vm275_vm0 = vcmp.gt.f32.partialorder %v1475_v0, %v1477_v6  ;;  %v323_v15 = vsub.f32 %v1475_v0, %v1477_v6  ;;  %v1500_v16 = vperm.slane %v265_v4, 1  ;;  %v1528_v27 = vld [vmem:[%s1464_s6 + $0x20] sm:$0xff]  ;;  %v1531_v28 = vld [vmem:[%s1464_s6 + $0x28] sm:$0xff]  ;;  %v1542_v31 = vld [vmem:[%s1464_s6 + $0x30] sm:$0xff]  ;;  %s895_s3 = sshll.u32 %s1664_s18, 4  ;;  %s896_s3 = int_to_ptr.vmem [resolvable:$true] %s895_s3 }
  0x2b   : > { %v1502_v17 = vperm.slane %v261_v2, 1  ;;  %vm276_vm1 = vcmp.gt.f32.partialorder %v1486_v10, %v1490_v12  ;;  %v324_v19 = vsub.f32 %v1486_v10, %v1490_v12  ;;  %v1511_v20 = vperm.slane %v259_v1, 2  ;;  %v1569_v39 = vld [vmem:[%s1464_s6 + $0x38] sm:$0xff]  ;;  %v1590_v46 = vld [vmem:[%s1464_s6 + $0x40] sm:$0xff]  ;;  %v1601_v50 = vld [vmem:[%s1464_s6 + $0x48] sm:$0xff]  ;;  %s897_s7 = sshll.u32 %s894_s29, 4  ;;  %s898_s7 = int_to_ptr.hbm [resolvable:$true] %s897_s7 }
  0x2c   : > { %v1513_v21 = vperm.slane %v267_v5, 2  ;;  %v371_v23 = vsel %vm275_vm0, %v323_v15, 1.0  ;;  %v1521_v24 = vperm.slane %v263_v3, 2  ;;  %v1523_v25 = vperm.slane %v265_v4, 2  ;;  %v1621_v60 = vld [vmem:[%s1464_s6 + $0x50] sm:$0xff]  ;;  %s880_s8 = scalar_lea.sflag [#allocation4], %s1458_s5 }
  0x2d   : > { %v1525_v26 = vperm.slane %v261_v2, 2  ;;  %1093 = vlog2.f32 %v371_v23  ;;  %v1534_v29 = vmul.f32 %v1483_v9, %v371_v23  ;;  %v372_v30 = vsel %vm276_vm1, %v324_v19, 1.0  ;;  %s1263_s15 = sshra.s32 %s898_s7, 4  ;;  %s1269_s25 = scalar_lea.hbm %s2474_s2, 768  ;;  %s1264_s15 = int_to_ptr.hbm [resolvable:$true] %s1263_s15 }
  0x2e   : > { %vm277_vm2 = vcmp.gt.f32.partialorder %v1505_v18, %v1511_v20  ;;  %1095 = vlog2.f32 %v372_v30  ;;  %v1545_v32 = vmul.f32 %v1500_v16, %v372_v30  ;;  %v325_v33 = vsub.f32 %v1505_v18, %v1511_v20  ;;  %s1265_s16 = scalar_lea.hbm %s1264_s15, 384  ;;  %p1270_p11 = scmp.lt.s32.totalorder %s1264_s15, %s2474_s2 }
  0x2f   : > { %vm278_vm3 = vcmp.gt.f32.partialorder %v1516_v22, %v1477_v6  ;;  %v326_v34 = vsub.f32 %v1516_v22, %v1477_v6  ;;  %vm279_vm4 = vcmp.gt.f32.partialorder %v1528_v27, %v1490_v12  ;;  %v327_v35 = vsub.f32 %v1528_v27, %v1490_v12  ;;  %p1266_p3 = scmp.ne.s32.totalorder %s1264_s15, %s1265_s16  ;;  %p1271_p12 = scmp.lt.s32.totalorder %s1269_s25, %s1265_s16 }
  0x30   : > { %vm280_vm5 = vcmp.gt.f32.partialorder %v1531_v28, %v1511_v20  ;;  %v373_v36 = vsel %vm277_vm2, %v325_v33, 1.0  ;;  %v328_v37 = vsub.f32 %v1531_v28, %v1511_v20  ;;  %vm281_vm6 = vcmp.gt.f32.partialorder %v1542_v31, %v1477_v6 }
  0x31   : > { %v329_v38 = vsub.f32 %v1542_v31, %v1477_v6  ;;  %1097 = vlog2.f32 %v373_v36  ;;  %v1572_v40 = vmul.f32 %v1523_v25, %v373_v36  ;;  %v374_v41 = vsel %vm278_vm3, %v326_v34, 1.0  ;;  %p1267_p5 = pnand %p1266_p3, %p1409_p8  ;;  %p1272_p0 = por %p1271_p12, %p1270_p11 }
  0x32   : > { %v375_v42 = vsel %vm279_vm4, %v327_v35, 1.0  ;;  %1099 = vlog2.f32 %v374_v41  ;;  %v1581_v43 = vmul.f32 %v1483_v9, %v374_v41  ;;  %v376_v45 = vsel %vm280_vm5, %v328_v37, 1.0 }
  0x33   : > { %v1584_v44 = vmul.f32 %v1500_v16, %v375_v42  ;;  %v1094_v47 = vpop.eup %1093  ;;  %1101 = vlog2.f32 %v375_v42  ;;  %v1593_v48 = vmul.f32 %v1523_v25, %v376_v45  ;;  %v377_v49 = vsel %vm281_vm6, %v329_v38, 1.0  ;;  %p1268_p7 = pneg %p1267_p5 }
  0x34   : > { %vm282_vm7 = vcmp.gt.f32.partialorder %v1569_v39, %v1490_v12  ;;  %v1096_v51 = vpop.eup %1095  ;;  %v420_v52 = vmul.f32 0.6931472, %v1094_v47  ;;  %1103 = vlog2.f32 %v376_v45  ;;  %v1604_v53 = vmul.f32 %v1483_v9, %v377_v49 }
  0x35   : > { %v330_v54 = vsub.f32 %v1569_v39, %v1490_v12  ;;  %v422_v55 = vmul.f32 0.6931472, %v1096_v51  ;;  %1105 = vlog2.f32 %v377_v49  ;;  %vm283_vm8 = vcmp.gt.f32.partialorder %v1590_v46, %v1511_v20  ;;  %p1273_p1 = pnand %p1272_p0, %p1268_p7 }
  0x36   : > { %v331_v56 = vsub.f32 %v1590_v46, %v1511_v20  ;;  %v522_v57 = vmul.f32 %v1479_v7, %v420_v52  ;;  %vm284_vm9 = vcmp.gt.f32.partialorder %v1601_v50, %v1477_v6  ;;  %v332_v59 = vsub.f32 %v1601_v50, %v1477_v6 }
  0x37   : > { %v378_v58 = vsel %vm282_vm7, %v330_v54, 1.0  ;;  %v1098_v61 = vpop.eup %1097  ;;  %v523_v62 = vmul.f32 %v1492_v13, %v422_v55  ;;  %vm285_vm10 = vcmp.gt.f32.partialorder %v1621_v60, %v1490_v12 }
  0x38   : > { %1107 = vlog2.f32 %v378_v58  ;;  %v1625_v63 = vmul.f32 %v1500_v16, %v378_v58  ;;  %v379_v1 = vsel %vm283_vm8, %v331_v56, 1.0  ;;  %v1100_v2 = vpop.eup %1099  ;;  %v577_v3 = vadd.f32 %v1481_v8, %v522_v57 }
  0x39   : > { %v424_v4 = vmul.f32 0.6931472, %v1098_v61  ;;  %1109 = vlog2.f32 %v379_v1  ;;  %v1632_v5 = vmul.f32 %v1523_v25, %v379_v1  ;;  %v1102_v15 = vpop.eup %1101  ;;  %v578_v19 = vadd.f32 %v1494_v14, %v523_v62 }
  0x3a   : > { %v426_v23 = vmul.f32 0.6931472, %v1100_v2  ;;  %v380_v30 = vsel %vm284_vm9, %v332_v59, 1.0  ;;  %v1104_v33 = vpop.eup %1103  ;;  %v680_v34 = vsub.f32 %v577_v3, %v1534_v29  ;;  %v428_v36 = vmul.f32 0.6931472, %v1102_v15 }
  0x3b   : > { %v524_v35 = vmul.f32 %v1513_v21, %v424_v4  ;;  %1111 = vlog2.f32 %v380_v30  ;;  %v1106_v37 = vpop.eup %1105  ;;  %v681_v38 = vsub.f32 %v578_v19, %v1545_v32  ;;  %v430_v42 = vmul.f32 0.6931472, %v1104_v33 }
  0x3c   : > { %v525_v41 = vmul.f32 %v1479_v7, %v426_v23  ;;  %v1645_v45 = vmul.f32 %v1483_v9, %v380_v30  ;;  %v735_v47 = vsel %vm275_vm0, %v680_v34, %v1488_v11  ;;  %v526_v49 = vmul.f32 %v1492_v13, %v428_v36 }
  0x3d   : > { %v579_v29 = vadd.f32 %v1521_v24, %v524_v35  ;;  %v432_v51 = vmul.f32 0.6931472, %v1106_v37  ;;  %v783_v54 = vsub.f32 0.0, %v735_v47  ;;  %v736_v32 = vsel %vm276_vm1, %v681_v38, %v1502_v17  ;;  %v1697_v38 = vld [vmem:[%s1464_s6 + $0x58] sm:$0xff] }
  0x3e   : > { %v1108_v52 = vpop.eup %1107  ;;  %v580_v55 = vadd.f32 %v1481_v8, %v525_v41  ;;  %v527_v56 = vmul.f32 %v1513_v21, %v430_v42  ;;  %v784_v58 = vsub.f32 0.0, %v736_v32  ;;  %v581_v59 = vadd.f32 %v1494_v14, %v526_v49  ;;  %v1709_v42 = vld [vmem:[%s1464_s6 + $0x60] sm:$0xff]  ;;  %v1734_v32 = vld [vmem:[%s1464_s6 + $0x70] sm:$0xff] }
  0x3f   : > { %v1110_v57 = vpop.eup %1109  ;;  %v682_v0 = vsub.f32 %v579_v29, %v1572_v40  ;;  %v528_v61 = vmul.f32 %v1479_v7, %v432_v51  ;;  %831 = vst [vmem:[%s1664_s18] sm:$0xff] %v783_v54  ;;  %v434_v1 = vmul.f32 0.6931472, %v1108_v52  ;;  %vm286_vm11 = vcmp.gt.f32.partialorder %v1697_v38, %v1511_v20  ;;  %v1721_v52 = vld [vmem:[%s1464_s6 + $0x68] sm:$0xff] }
  0x40   : > { %v683_v10 = vsub.f32 %v580_v55, %v1581_v43  ;;  %v582_v62 = vadd.f32 %v1521_v24, %v527_v56  ;;  %v436_v2 = vmul.f32 0.6931472, %v1110_v57  ;;  %832 = vst [vmem:[%s1664_s18 + $0x8] sm:$0xff] %v784_v58  ;;  %v684_v4 = vsub.f32 %v581_v59, %v1584_v44  ;;  %v1745_v58 = vld [vmem:[%s1464_s6 + $0x78] sm:$0xff] }
  0x41   : > { %v1112_v3 = vpop.eup %1111  ;;  %v737_v40 = vsel %vm277_vm2, %v682_v0, %v1525_v26  ;;  %v583_v15 = vadd.f32 %v1481_v8, %v528_v61  ;;  %v333_v43 = vsub.f32 %v1621_v60, %v1490_v12  ;;  %v529_v18 = vmul.f32 %v1492_v13, %v434_v1 }
  0x42   : > { %v785_v19 = vsub.f32 0.0, %v737_v40  ;;  %v738_v23 = vsel %vm278_vm3, %v683_v10, %v1488_v11  ;;  %v685_v30 = vsub.f32 %v582_v62, %v1593_v48  ;;  %v739_v44 = vsel %vm279_vm4, %v684_v4, %v1502_v17 }
  0x43   : > { %v786_v33 = vsub.f32 0.0, %v738_v23  ;;  %v686_v34 = vsub.f32 %v583_v15, %v1604_v53  ;;  %v530_v35 = vmul.f32 %v1513_v21, %v436_v2  ;;  %v787_v36 = vsub.f32 0.0, %v739_v44  ;;  %v1771_v2 = vld [vmem:[%s1464_s6 + $0x80] sm:$0xff]  ;;  %v1780_v15 = vld [vmem:[%s1464_s6 + $0x88] sm:$0xff] }
  0x44   : > { %833 = vst [vmem:[%s1664_s18 + $0x10] sm:$0xff] %v785_v19  ;;  %v740_v22 = vsel %vm280_vm5, %v685_v30, %v1525_v26  ;;  %v584_v48 = vadd.f32 %v1494_v14, %v529_v18  ;;  %v438_v37 = vmul.f32 0.6931472, %v1112_v3  ;;  %v381_v28 = vsel %vm285_vm10, %v333_v43, 1.0  ;;  %v1791_v30 = vld [vmem:[%s1464_s6 + $0x90] sm:$0xff] }
  0x45   : > { %834 = vst [vmem:[%s1664_s18 + $0x18] sm:$0xff] %v786_v33  ;;  %v788_v27 = vsub.f32 0.0, %v740_v22  ;;  %v741_v53 = vsel %vm281_vm6, %v686_v34, %v1488_v11  ;;  %v585_v41 = vadd.f32 %v1521_v24, %v530_v35  ;;  %1113 = vlog2.f32 %v381_v28 }
  0x46   : > { %835 = vst [vmem:[%s1664_s18 + $0x20] sm:$0xff] %v787_v36  ;;  %v789_v47 = vsub.f32 0.0, %v741_v53  ;;  %v687_v29 = vsub.f32 %v584_v48, %v1625_v63  ;;  %v531_v49 = vmul.f32 %v1479_v7, %v438_v37  ;;  %v334_v51 = vsub.f32 %v1697_v38, %v1511_v20  ;;  %v1813_v37 = vld [vmem:[%s1464_s6 + $0x98] sm:$0xff] }
  0x47   : > { %836 = vst [vmem:[%s1664_s18 + $0x28] sm:$0xff] %v788_v27  ;;  %v688_v31 = vsub.f32 %v585_v41, %v1632_v5  ;;  %vm287_vm12 = vcmp.gt.f32.partialorder %v1709_v42, %v1477_v6  ;;  %v335_v5 = vsub.f32 %v1709_v42, %v1477_v6  ;;  %v642_v39 = vmul.f32 %v1500_v16, %v381_v28 }
  0x48   : > { %837 = vst [vmem:[%s1664_s18 + $0x30] sm:$0xff] %v789_v47  ;;  %v742_v63 = vsel %vm282_vm7, %v687_v29, %v1502_v17  ;;  %v586_v54 = vadd.f32 %v1481_v8, %v531_v49  ;;  %v382_v57 = vsel %vm286_vm11, %v334_v51, 1.0  ;;  %vm288_vm13 = vcmp.gt.f32.partialorder %v1721_v52, %v1490_v12 }
  0x49   : > { %v790_v55 = vsub.f32 0.0, %v742_v63  ;;  %v743_v56 = vsel %vm283_vm8, %v688_v31, %v1525_v26  ;;  %1115 = vlog2.f32 %v382_v57  ;;  %v383_v46 = vsel %vm287_vm12, %v335_v5, 1.0 }
  0x4a   : > { %v791_v0 = vsub.f32 0.0, %v743_v56  ;;  %v689_v59 = vsub.f32 %v586_v54, %v1645_v45  ;;  %v336_v61 = vsub.f32 %v1721_v52, %v1490_v12  ;;  %vm289_vm14 = vcmp.gt.f32.partialorder %v1734_v32, %v1511_v20  ;;  %v1892_v52 = vld [vmem:[%s1464_s6 + $0xa8] sm:$0xff] }
  0x4b   : > { %838 = vst [vmem:[%s1664_s18 + $0x38] sm:$0xff] %v790_v55  ;;  %v337_v10 = vsub.f32 %v1734_v32, %v1511_v20  ;;  %v1114_v45 = vpop.eup %1113  ;;  %v1766_v1 = vmul.f32 %v1523_v25, %v382_v57  ;;  %1117 = vlog2.f32 %v383_v46  ;;  %vm290_vm15 = vcmp.gt.f32.partialorder %v1745_v58, %v1477_v6 }
  0x4c   : > { %839 = vst [vmem:[%s1664_s18 + $0x40] sm:$0xff] %v791_v0  ;;  %v744_v62 = vsel %vm284_vm9, %v689_v59, %v1488_v11  ;;  %v440_v40 = vmul.f32 0.6931472, %v1114_v45  ;;  %v384_v4 = vsel %vm288_vm13, %v336_v61, 1.0  ;;  %v1783_v43 = vmul.f32 %v1483_v9, %v383_v46  ;;  %v1842_v0 = vld [vmem:[%s1464_s6 + $0xa0] sm:$0xff] }
  0x4d   : > { %v792_v3 = vsub.f32 0.0, %v744_v62  ;;  %v385_v50 = vsel %vm289_vm14, %v337_v10, 1.0  ;;  %1119 = vlog2.f32 %v384_v4  ;;  %v1786_v19 = vmul.f32 %v1500_v16, %v384_v4 }
  0x4e   : > { %v338_v23 = vsub.f32 %v1745_v58, %v1477_v6  ;;  %v532_v18 = vmul.f32 %v1492_v13, %v440_v40  ;;  %1121 = vlog2.f32 %v385_v50  ;;  %vm291_vm0 = vcmp.gt.f32.partialorder %v1771_v2, %v1490_v12 }
  0x4f   : > { %840 = vst [vmem:[%s1664_s18 + $0x48] sm:$0xff] %v792_v3  ;;  %v339_v33 = vsub.f32 %v1771_v2, %v1490_v12  ;;  %v1116_v44 = vpop.eup %1115  ;;  %v1800_v34 = vmul.f32 %v1523_v25, %v385_v50  ;;  %vm292_vm1 = vcmp.gt.f32.partialorder %v1780_v15, %v1511_v20  ;;  %v340_v36 = vsub.f32 %v1780_v15, %v1511_v20 }
  0x50   : > { %v386_v35 = vsel %vm290_vm15, %v338_v23, 1.0  ;;  %v587_v22 = vadd.f32 %v1494_v14, %v532_v18  ;;  %v442_v48 = vmul.f32 0.6931472, %v1116_v44  ;;  %vm293_vm2 = vcmp.gt.f32.partialorder %v1791_v30, %v1477_v6 }
  0x51   : > { %1123 = vlog2.f32 %v386_v35  ;;  %v1118_v27 = vpop.eup %1117  ;;  %v1816_v53 = vmul.f32 %v1483_v9, %v386_v35  ;;  %v387_v41 = vsel %vm291_vm0, %v339_v33, 1.0  ;;  %v388_v28 = vsel %vm292_vm1, %v340_v36, 1.0 }
  0x52   : > { %v341_v47 = vsub.f32 %v1791_v30, %v1477_v6  ;;  %v690_v29 = vsub.f32 %v587_v22, %v642_v39  ;;  %v533_v49 = vmul.f32 %v1513_v21, %v442_v48  ;;  %v444_v31 = vmul.f32 0.6931472, %v1118_v27 }
  0x53   : > { %1125 = vlog2.f32 %v387_v41  ;;  %v1120_v51 = vpop.eup %1119  ;;  %v1828_v63 = vmul.f32 %v1500_v16, %v387_v41  ;;  %vm294_vm3 = vcmp.gt.f32.partialorder %v1813_v37, %v1490_v12  ;;  %v1845_v61 = vmul.f32 %v1523_v25, %v388_v28 }
  0x54   : > { %1127 = vlog2.f32 %v388_v28  ;;  %v389_v54 = vsel %vm293_vm2, %v341_v47, 1.0  ;;  %v1122_v5 = vpop.eup %1121  ;;  %v745_v55 = vsel %vm285_vm10, %v690_v29, %v1502_v17  ;;  %v588_v56 = vadd.f32 %v1521_v24, %v533_v49 }
  0x55   : > { %v534_v39 = vmul.f32 %v1479_v7, %v444_v31  ;;  %v446_v57 = vmul.f32 0.6931472, %v1120_v51  ;;  %v793_v59 = vsub.f32 0.0, %v745_v55  ;;  %v448_v46 = vmul.f32 0.6931472, %v1122_v5 }
  0x56   : > { %1129 = vlog2.f32 %v389_v54  ;;  %v691_v45 = vsub.f32 %v588_v56, %v1766_v1  ;;  %v342_v3 = vsub.f32 %v1813_v37, %v1490_v12  ;;  %vm295_vm4 = vcmp.gt.f32.partialorder %v1842_v0, %v1511_v20  ;;  %v1994_v37 = vld [vmem:[%s1464_s6 + $0xe0] sm:$0xff] }
  0x57   : > { %v1124_v10 = vpop.eup %1123  ;;  %v589_v62 = vadd.f32 %v1481_v8, %v534_v39  ;;  %v535_v60 = vmul.f32 %v1492_v13, %v446_v57  ;;  %841 = vst [vmem:[%s1664_s18 + $0x50] sm:$0xff] %v793_v59  ;;  %v536_v40 = vmul.f32 %v1513_v21, %v448_v46  ;;  %v343_v50 = vsub.f32 %v1842_v0, %v1511_v20 }
  0x58   : > { %v450_v4 = vmul.f32 0.6931472, %v1124_v10  ;;  %v746_v1 = vsel %vm286_vm11, %v691_v45, %v1525_v26  ;;  %v390_v44 = vsel %vm294_vm3, %v342_v3, 1.0  ;;  %v650_v5 = vmul.f32 %v1483_v9, %v389_v54  ;;  %v1900_v10 = vld [vmem:[%s1464_s6 + $0xb0] sm:$0xff] }
  0x59   : > { %v1126_v23 = vpop.eup %1125  ;;  %v692_v18 = vsub.f32 %v589_v62, %v1783_v43  ;;  %v590_v33 = vadd.f32 %v1494_v14, %v535_v60  ;;  %v794_v36 = vsub.f32 0.0, %v746_v1  ;;  %v591_v22 = vadd.f32 %v1521_v24, %v536_v40 }
  0x5a   : > { %v1128_v35 = vpop.eup %1127  ;;  %v537_v48 = vmul.f32 %v1479_v7, %v450_v4  ;;  %v452_v27 = vmul.f32 0.6931472, %v1126_v23  ;;  %1131 = vlog2.f32 %v390_v44  ;;  %v391_v54 = vsel %vm295_vm4, %v343_v50, 1.0  ;;  %v1929_v23 = vld [vmem:[%s1464_s6 + $0xb8] sm:$0xff] }
  0x5b   : > { %v747_v38 = vsel %vm287_vm12, %v692_v18, %v1488_v11  ;;  %v693_v43 = vsub.f32 %v590_v33, %v1786_v19  ;;  %v454_v41 = vmul.f32 0.6931472, %v1128_v35  ;;  %842 = vst [vmem:[%s1664_s18 + $0x58] sm:$0xff] %v794_v36  ;;  %v694_v29 = vsub.f32 %v591_v22, %v1800_v34  ;;  %v1937_v36 = vld [vmem:[%s1464_s6 + $0xc0] sm:$0xff] }
  0x5c   : > { %v1130_v28 = vpop.eup %1129  ;;  %v795_v47 = vsub.f32 0.0, %v747_v38  ;;  %v592_v49 = vadd.f32 %v1481_v8, %v537_v48  ;;  %v538_v31 = vmul.f32 %v1492_v13, %v452_v27  ;;  %1133 = vlog2.f32 %v391_v54  ;;  %v1949_v48 = vld [vmem:[%s1464_s6 + $0xc8] sm:$0xff]  ;;  %v1952_v27 = vld [vmem:[%s1464_s6 + $0xd0] sm:$0xff] }
  0x5d   : > { %v748_v42 = vsel %vm288_vm13, %v693_v43, %v1502_v17  ;;  %v539_v19 = vmul.f32 %v1513_v21, %v454_v41  ;;  %v456_v51 = vmul.f32 0.6931472, %v1130_v28  ;;  %v749_v34 = vsel %vm289_vm14, %v694_v29, %v1525_v26 }
  0x5e   : > { %843 = vst [vmem:[%s1664_s18 + $0x60] sm:$0xff] %v795_v47  ;;  %v796_v55 = vsub.f32 0.0, %v748_v42  ;;  %v695_v56 = vsub.f32 %v592_v49, %v1816_v53  ;;  %v593_v39 = vadd.f32 %v1494_v14, %v538_v31  ;;  %v797_v57 = vsub.f32 0.0, %v749_v34 }
  0x5f   : > { %v594_v59 = vadd.f32 %v1521_v24, %v539_v19  ;;  %v540_v46 = vmul.f32 %v1479_v7, %v456_v51  ;;  %vm296_vm5 = vcmp.gt.f32.partialorder %v1892_v52, %v1477_v6  ;;  %v344_v40 = vsub.f32 %v1892_v52, %v1477_v6 }
  0x60   : > { %844 = vst [vmem:[%s1664_s18 + $0x68] sm:$0xff] %v796_v55  ;;  %v750_v32 = vsel %vm290_vm15, %v695_v56, %v1488_v11  ;;  %v696_v53 = vsub.f32 %v593_v39, %v1828_v63  ;;  %v1132_v45 = vpop.eup %1131  ;;  %vm297_vm6 = vcmp.gt.f32.partialorder %v1900_v10, %v1490_v12  ;;  %v345_v2 = vsub.f32 %v1900_v10, %v1490_v12 }
  0x61   : > { %845 = vst [vmem:[%s1664_s18 + $0x70] sm:$0xff] %v797_v57  ;;  %v798_v62 = vsub.f32 0.0, %v750_v32  ;;  %v697_v60 = vsub.f32 %v594_v59, %v1845_v61  ;;  %v595_v3 = vadd.f32 %v1481_v8, %v540_v46  ;;  %v458_v63 = vmul.f32 0.6931472, %v1132_v45  ;;  %v1991_v46 = vld [vmem:[%s1464_s6 + $0xd8] sm:$0xff] }
  0x62   : > { %v751_v58 = vsel %vm291_vm0, %v696_v53, %v1502_v17  ;;  %v651_v33 = vmul.f32 %v1500_v16, %v390_v44  ;;  %v392_v35 = vsel %vm296_vm5, %v344_v40, 1.0  ;;  %v652_v22 = vmul.f32 %v1523_v25, %v391_v54  ;;  %v1134_v38 = vpop.eup %1133 }
  0x63   : > { %846 = vst [vmem:[%s1664_s18 + $0x78] sm:$0xff] %v798_v62  ;;  %v799_v61 = vsub.f32 0.0, %v751_v58  ;;  %v752_v4 = vsel %vm292_vm1, %v697_v60, %v1525_v26  ;;  %v698_v50 = vsub.f32 %v595_v3, %v650_v5  ;;  %v541_v18 = vmul.f32 %v1492_v13, %v458_v63  ;;  %v2003_v62 = vld [vmem:[%s1464_s6 + $0xe8] sm:$0xff] }
  0x64   : > { %v800_v1 = vsub.f32 0.0, %v752_v4  ;;  %1135 = vlog2.f32 %v392_v35  ;;  %v393_v44 = vsel %vm297_vm6, %v345_v2, 1.0  ;;  %vm298_vm7 = vcmp.gt.f32.partialorder %v1929_v23, %v1511_v20 }
  0x65   : > { %847 = vst [vmem:[%s1664_s18 + $0x80] sm:$0xff] %v799_v61  ;;  %v753_v15 = vsel %vm293_vm2, %v698_v50, %v1488_v11  ;;  %v596_v41 = vadd.f32 %v1494_v14, %v541_v18  ;;  %1137 = vlog2.f32 %v393_v44  ;;  %v460_v30 = vmul.f32 0.6931472, %v1134_v38 }
  0x66   : > { %848 = vst [vmem:[%s1664_s18 + $0x88] sm:$0xff] %v800_v1  ;;  %v801_v43 = vsub.f32 0.0, %v753_v15  ;;  %v346_v28 = vsub.f32 %v1929_v23, %v1511_v20  ;;  %vm299_vm8 = vcmp.gt.f32.partialorder %v1937_v36, %v1477_v6  ;;  %v347_v47 = vsub.f32 %v1937_v36, %v1477_v6 }
  0x67   : > { %v699_v29 = vsub.f32 %v596_v41, %v651_v33  ;;  %vm300_vm9 = vcmp.gt.f32.partialorder %v1949_v48, %v1490_v12  ;;  %v348_v49 = vsub.f32 %v1949_v48, %v1490_v12  ;;  %vm301_vm10 = vcmp.gt.f32.partialorder %v1952_v27, %v1511_v20 }
  0x68   : > { %849 = vst [vmem:[%s1664_s18 + $0x90] sm:$0xff] %v801_v43  ;;  %v542_v31 = vmul.f32 %v1513_v21, %v460_v30  ;;  %v394_v42 = vsel %vm298_vm7, %v346_v28, 1.0  ;;  %v395_v19 = vsel %vm299_vm8, %v347_v47, 1.0  ;;  %v349_v51 = vsub.f32 %v1952_v27, %v1511_v20 }
  0x69   : > { %v754_v5 = vsel %vm294_vm3, %v699_v29, %v1502_v17  ;;  %v653_v55 = vmul.f32 %v1483_v9, %v392_v35  ;;  %v654_v34 = vmul.f32 %v1500_v16, %v393_v44  ;;  %1139 = vlog2.f32 %v394_v42 }
  0x6a   : > { %v1136_v56 = vpop.eup %1135  ;;  %v802_v39 = vsub.f32 0.0, %v754_v5  ;;  %v597_v57 = vadd.f32 %v1521_v24, %v542_v31  ;;  %1141 = vlog2.f32 %v395_v19  ;;  %v396_v59 = vsel %vm300_vm9, %v348_v49, 1.0 }
  0x6b   : > { %v1138_v54 = vpop.eup %1137  ;;  %v462_v32 = vmul.f32 0.6931472, %v1136_v56  ;;  %v1997_v53 = vmul.f32 %v1523_v25, %v394_v42  ;;  %1143 = vlog2.f32 %v396_v59  ;;  %v397_v45 = vsel %vm301_vm10, %v349_v51, 1.0 }
  0x6c   : > { %850 = vst [vmem:[%s1664_s18 + $0x98] sm:$0xff] %v802_v39  ;;  %v700_v60 = vsub.f32 %v597_v57, %v652_v22  ;;  %v464_v3 = vmul.f32 0.6931472, %v1138_v54  ;;  %v2007_v58 = vmul.f32 %v1483_v9, %v395_v19  ;;  %1145 = vlog2.f32 %v397_v45 }
  0x6d   : > { %v543_v63 = vmul.f32 %v1479_v7, %v462_v32  ;;  %vm302_vm11 = vcmp.gt.f32.partialorder %v1991_v46, %v1477_v6  ;;  %v350_v40 = vsub.f32 %v1991_v46, %v1477_v6  ;;  %vm303_vm12 = vcmp.gt.f32.partialorder %v1994_v37, %v1490_v12  ;;  %v2062_v32 = vld [vmem:[%s1464_s6 + $0xf8] sm:$0xff] }
  0x6e   : > { %v755_v61 = vsel %vm295_vm4, %v700_v60, %v1525_v26  ;;  %v544_v4 = vmul.f32 %v1492_v13, %v464_v3  ;;  %v351_v50 = vsub.f32 %v1994_v37, %v1490_v12  ;;  %vm304_vm13 = vcmp.gt.f32.partialorder %v2003_v62, %v1511_v20 }
  0x6f   : > { %v1140_v2 = vpop.eup %1139  ;;  %v803_v1 = vsub.f32 0.0, %v755_v61  ;;  %v598_v18 = vadd.f32 %v1481_v8, %v543_v63  ;;  %v398_v33 = vsel %vm302_vm11, %v350_v40, 1.0  ;;  %v352_v0 = vsub.f32 %v2003_v62, %v1511_v20 }
  0x70   : > { %v1142_v35 = vpop.eup %1141  ;;  %v599_v15 = vadd.f32 %v1494_v14, %v544_v4  ;;  %v466_v22 = vmul.f32 0.6931472, %v1140_v2  ;;  %v657_v44 = vmul.f32 %v1500_v16, %v396_v59  ;;  %1147 = vlog2.f32 %v398_v33 }
  0x71   : > { %v1144_v38 = vpop.eup %1143  ;;  %851 = vst [vmem:[%s1664_s18 + $0xa0] sm:$0xff] %v803_v1  ;;  %v701_v43 = vsub.f32 %v598_v18, %v653_v55  ;;  %v468_v41 = vmul.f32 0.6931472, %v1142_v35  ;;  %v399_v30 = vsel %vm303_vm12, %v351_v50, 1.0  ;;  %v2040_v28 = vsel %vm304_vm13, %v352_v0, 1.0  ;;  %v2050_v55 = vld [vmem:[%s1464_s6 + $0xf0] sm:$0xff] }
  0x72   : > { %v1146_v47 = vpop.eup %1145  ;;  %v702_v29 = vsub.f32 %v599_v15, %v654_v34  ;;  %v545_v49 = vmul.f32 %v1513_v21, %v466_v22  ;;  %v470_v31 = vmul.f32 0.6931472, %v1144_v38  ;;  %1149 = vlog2.f32 %v399_v30 }
  0x73   : > { %v756_v42 = vsel %vm296_vm5, %v701_v43, %v1488_v11  ;;  %v546_v19 = vmul.f32 %v1479_v7, %v468_v41  ;;  %v472_v51 = vmul.f32 0.6931472, %v1146_v47  ;;  %v658_v5 = vmul.f32 %v1523_v25, %v397_v45 }
  0x74   : > { %v804_v34 = vsub.f32 0.0, %v756_v42  ;;  %v757_v56 = vsel %vm297_vm6, %v702_v29, %v1502_v17  ;;  %v600_v39 = vadd.f32 %v1521_v24, %v545_v49  ;;  %v547_v52 = vmul.f32 %v1492_v13, %v470_v31  ;;  %v2108_v31 = vld [vmem:[%s1464_s6 + $0x108] sm:$0xff] }
  0x75   : > { %v805_v57 = vsub.f32 0.0, %v757_v56  ;;  %v601_v59 = vadd.f32 %v1481_v8, %v546_v19  ;;  %v548_v54 = vmul.f32 %v1513_v21, %v472_v51  ;;  %1151 = vlog2.f32 %v2040_v28 }
  0x76   : > { %v1148_v45 = vpop.eup %1147  ;;  %852 = vst [vmem:[%s1664_s18 + $0xa8] sm:$0xff] %v804_v34  ;;  %v703_v60 = vsub.f32 %v600_v39, %v1997_v53  ;;  %v602_v10 = vadd.f32 %v1494_v14, %v547_v52  ;;  %v659_v3 = vmul.f32 %v1483_v9, %v398_v33  ;;  %vm305_vm14 = vcmp.gt.f32.partialorder %v2050_v55, %v1477_v6  ;;  %v2124_v34 = vld [vmem:[%s1464_s6 + $0x110] sm:$0xff] }
  0x77   : > { %853 = vst [vmem:[%s1664_s18 + $0xb0] sm:$0xff] %v805_v57  ;;  %v704_v63 = vsub.f32 %v601_v59, %v2007_v58  ;;  %v603_v40 = vadd.f32 %v1521_v24, %v548_v54  ;;  %v474_v61 = vmul.f32 0.6931472, %v1148_v45  ;;  %v353_v4 = vsub.f32 %v2050_v55, %v1477_v6 }
  0x78   : > { %v1150_v50 = vpop.eup %1149  ;;  %v758_v53 = vsel %vm298_vm7, %v703_v60, %v1525_v26  ;;  %v705_v2 = vsub.f32 %v602_v10, %v657_v44  ;;  %vm306_vm15 = vcmp.gt.f32.partialorder %v2062_v32, %v1490_v12  ;;  %v354_v58 = vsub.f32 %v2062_v32, %v1490_v12  ;;  %v2096_v44 = vld [vmem:[%s1464_s6 + $0x100] sm:$0xff]  ;;  %v2147_v10 = vld [vmem:[%s1464_s6 + $0x118] sm:$0xff] }
  0x79   : > { %v806_v1 = vsub.f32 0.0, %v758_v53  ;;  %v759_v18 = vsel %vm299_vm8, %v704_v63, %v1488_v11  ;;  %v706_v33 = vsub.f32 %v603_v40, %v658_v5  ;;  %v549_v0 = vmul.f32 %v1479_v7, %v474_v61  ;;  %v2155_v61 = vld [vmem:[%s1464_s6 + $0x120] sm:$0xff] }
  0x7a   : > { %v807_v35 = vsub.f32 0.0, %v759_v18  ;;  %v760_v23 = vsel %vm300_vm9, %v705_v2, %v1502_v17  ;;  %v476_v15 = vmul.f32 0.6931472, %v1150_v50  ;;  %v401_v22 = vsel %vm305_vm14, %v353_v4, 1.0 }
  0x7b   : > { %v1152_v36 = vpop.eup %1151  ;;  %854 = vst [vmem:[%s1664_s18 + $0xb8] sm:$0xff] %v806_v1  ;;  %v808_v38 = vsub.f32 0.0, %v760_v23  ;;  %v761_v43 = vsel %vm301_vm10, %v706_v33, %v1525_v26  ;;  %v604_v48 = vadd.f32 %v1481_v8, %v549_v0  ;;  %1153 = vlog2.f32 %v401_v22  ;;  %v2178_v23 = vld [vmem:[%s1464_s6 + $0x130] sm:$0xff] }
  0x7c   : > { %855 = vst [vmem:[%s1664_s18 + $0xc0] sm:$0xff] %v807_v35  ;;  %v809_v41 = vsub.f32 0.0, %v761_v43  ;;  %v550_v47 = vmul.f32 %v1492_v13, %v476_v15  ;;  %v660_v29 = vmul.f32 %v1500_v16, %v399_v30  ;;  %v478_v49 = vmul.f32 0.6931472, %v1152_v36 }
  0x7d   : > { %856 = vst [vmem:[%s1664_s18 + $0xc8] sm:$0xff] %v808_v38  ;;  %v707_v42 = vsub.f32 %v604_v48, %v659_v3  ;;  %v402_v27 = vsel %vm306_vm15, %v354_v58, 1.0  ;;  %vm307_vm0 = vcmp.gt.f32.partialorder %v2096_v44, %v1511_v20  ;;  %v355_v19 = vsub.f32 %v2096_v44, %v1511_v20  ;;  %v2163_v58 = vld [vmem:[%s1464_s6 + $0x128] sm:$0xff] }
  0x7e   : > { %857 = vst [vmem:[%s1664_s18 + $0xd0] sm:$0xff] %v809_v41  ;;  %v605_v51 = vadd.f32 %v1494_v14, %v550_v47  ;;  %v551_v30 = vmul.f32 %v1513_v21, %v478_v49  ;;  %v661_v5 = vmul.f32 %v1523_v25, %v2040_v28  ;;  %1155 = vlog2.f32 %v402_v27 }
  0x7f   : > { %v762_v56 = vsel %vm302_vm11, %v707_v42, %v1488_v11  ;;  %v403_v39 = vsel %vm307_vm0, %v355_v19, 1.0  ;;  %vm308_vm1 = vcmp.gt.f32.partialorder %v2108_v31, %v1477_v6  ;;  %v356_v28 = vsub.f32 %v2108_v31, %v1477_v6 }
  0x80   : > { %v810_v52 = vsub.f32 0.0, %v762_v56  ;;  %v708_v57 = vsub.f32 %v605_v51, %v660_v29  ;;  %v606_v59 = vadd.f32 %v1521_v24, %v551_v30  ;;  %1157 = vlog2.f32 %v403_v39 }
  0x81   : > { %v1154_v54 = vpop.eup %1153  ;;  %v662_v46 = vmul.f32 %v1483_v9, %v401_v22  ;;  %v404_v45 = vsel %vm308_vm1, %v356_v28, 1.0  ;;  %vm309_vm2 = vcmp.gt.f32.partialorder %v2124_v34, %v1490_v12  ;;  %v357_v60 = vsub.f32 %v2124_v34, %v1490_v12 }
  0x82   : > { %858 = vst [vmem:[%s1664_s18 + $0xd8] sm:$0xff] %v810_v52  ;;  %v763_v3 = vsel %vm303_vm12, %v708_v57, %v1502_v17  ;;  %v709_v63 = vsub.f32 %v606_v59, %v661_v5  ;;  %v480_v40 = vmul.f32 0.6931472, %v1154_v54  ;;  %1159 = vlog2.f32 %v404_v45  ;;  %v2213_v54 = vld [vmem:[%s1464_s6 + $0x138] sm:$0xff] }
  0x83   : > { %v811_v4 = vsub.f32 0.0, %v763_v3  ;;  %v663_v50 = vmul.f32 %v1500_v16, %v402_v27  ;;  %v664_v53 = vmul.f32 %v1523_v25, %v403_v39  ;;  %v405_v2 = vsel %vm309_vm2, %v357_v60, 1.0 }
  0x84   : > { %v1156_v37 = vpop.eup %1155  ;;  %v764_v1 = vsel %vm304_vm13, %v709_v63, %v1525_v26  ;;  %v552_v18 = vmul.f32 %v1479_v7, %v480_v40  ;;  %1161 = vlog2.f32 %v405_v2  ;;  %vm310_vm3 = vcmp.gt.f32.partialorder %v2147_v10, %v1511_v20  ;;  %v2226_v40 = vld [vmem:[%s1464_s6 + $0x140] sm:$0xff] }
  0x85   : > { %859 = vst [vmem:[%s1664_s18 + $0xe0] sm:$0xff] %v811_v4  ;;  %v812_v33 = vsub.f32 0.0, %v764_v1  ;;  %v482_v0 = vmul.f32 0.6931472, %v1156_v37  ;;  %v358_v35 = vsub.f32 %v2147_v10, %v1511_v20  ;;  %vm311_vm4 = vcmp.gt.f32.partialorder %v2155_v61, %v1477_v6 }
  0x86   : > { %v1158_v62 = vpop.eup %1157  ;;  %v607_v15 = vadd.f32 %v1481_v8, %v552_v18  ;;  %v665_v22 = vmul.f32 %v1483_v9, %v404_v45  ;;  %v359_v36 = vsub.f32 %v2155_v61, %v1477_v6  ;;  %v360_v38 = vsub.f32 %v2163_v58, %v1490_v12 }
  0x87   : > { %860 = vst [vmem:[%s1664_s18 + $0xe8] sm:$0xff] %v812_v33  ;;  %v553_v43 = vmul.f32 %v1492_v13, %v482_v0  ;;  %v484_v48 = vmul.f32 0.6931472, %v1158_v62  ;;  %v406_v41 = vsel %vm310_vm3, %v358_v35, 1.0  ;;  %vm312_vm5 = vcmp.gt.f32.partialorder %v2163_v58, %v1490_v12 }
  0x88   : > { %v1160_v47 = vpop.eup %1159  ;;  %v710_v29 = vsub.f32 %v607_v15, %v662_v46  ;;  %1163 = vlog2.f32 %v406_v41  ;;  %v407_v49 = vsel %vm311_vm4, %v359_v36, 1.0  ;;  %vm313_vm6 = vcmp.gt.f32.partialorder %v2178_v23, %v1511_v20 }
  0x89   : > { %v608_v42 = vadd.f32 %v1494_v14, %v553_v43  ;;  %v554_v27 = vmul.f32 %v1513_v21, %v484_v48  ;;  %v486_v19 = vmul.f32 0.6931472, %v1160_v47  ;;  %1165 = vlog2.f32 %v407_v49 }
  0x8a   : > { %v1162_v51 = vpop.eup %1161  ;;  %v765_v30 = vsel %vm305_vm14, %v710_v29, %v1488_v11  ;;  %v666_v5 = vmul.f32 %v1500_v16, %v405_v2  ;;  %v408_v56 = vsel %vm312_vm5, %v360_v38, 1.0  ;;  %v361_v39 = vsub.f32 %v2178_v23, %v1511_v20 }
  0x8b   : > { %v813_v28 = vsub.f32 0.0, %v765_v30  ;;  %v711_v52 = vsub.f32 %v608_v42, %v663_v50  ;;  %v609_v57 = vadd.f32 %v1521_v24, %v554_v27  ;;  %v555_v59 = vmul.f32 %v1479_v7, %v486_v19  ;;  %v2260_v27 = vld [vmem:[%s1464_s6 + $0x148] sm:$0xff] }
  0x8c   : > { %v488_v55 = vmul.f32 0.6931472, %v1162_v51  ;;  %v667_v46 = vmul.f32 %v1523_v25, %v406_v41  ;;  %1167 = vlog2.f32 %v408_v56  ;;  %v409_v45 = vsel %vm313_vm6, %v361_v39, 1.0 }
  0x8d   : > { %861 = vst [vmem:[%s1664_s18 + $0xf0] sm:$0xff] %v813_v28  ;;  %v766_v60 = vsel %vm306_vm15, %v711_v52, %v1502_v17  ;;  %v712_v3 = vsub.f32 %v609_v57, %v664_v53  ;;  %v610_v63 = vadd.f32 %v1481_v8, %v555_v59  ;;  %1169 = vlog2.f32 %v409_v45 }
  0x8e   : > { %v1164_v4 = vpop.eup %1163  ;;  %v814_v50 = vsub.f32 0.0, %v766_v60  ;;  %v556_v2 = vmul.f32 %v1492_v13, %v488_v55  ;;  %v668_v37 = vmul.f32 %v1483_v9, %v407_v49  ;;  %vm314_vm7 = vcmp.gt.f32.partialorder %v2213_v54, %v1477_v6  ;;  %v2289_v60 = vld [vmem:[%s1464_s6 + $0x158] sm:$0xff] }
  0x8f   : > { %v1166_v1 = vpop.eup %1165  ;;  %v767_v32 = vsel %vm307_vm0, %v712_v3, %v1525_v26  ;;  %v713_v53 = vsub.f32 %v610_v63, %v665_v22  ;;  %v490_v18 = vmul.f32 0.6931472, %v1164_v4  ;;  %v362_v33 = vsub.f32 %v2213_v54, %v1477_v6 }
  0x90   : > { %862 = vst [vmem:[%s1664_s18 + $0xf8] sm:$0xff] %v814_v50  ;;  %v815_v0 = vsub.f32 0.0, %v767_v32  ;;  %v611_v35 = vadd.f32 %v1494_v14, %v556_v2  ;;  %v492_v62 = vmul.f32 0.6931472, %v1166_v1  ;;  %vm315_vm8 = vcmp.gt.f32.partialorder %v2226_v40, %v1490_v12 }
  0x91   : > { %v768_v44 = vsel %vm308_vm1, %v713_v53, %v1488_v11  ;;  %v557_v15 = vmul.f32 %v1513_v21, %v490_v18  ;;  %v410_v22 = vsel %vm314_vm7, %v362_v33, 1.0  ;;  %v363_v36 = vsub.f32 %v2226_v40, %v1490_v12  ;;  %v2307_v33 = vld [vmem:[%s1464_s6 + $0x160] sm:$0xff] }
  0x92   : > { %v1168_v38 = vpop.eup %1167  ;;  %863 = vst [vmem:[%s1664_s18 + $0x100] sm:$0xff] %v815_v0  ;;  %v816_v43 = vsub.f32 0.0, %v768_v44  ;;  %v714_v48 = vsub.f32 %v611_v35, %v666_v5  ;;  %v558_v41 = vmul.f32 %v1479_v7, %v492_v62  ;;  %1171 = vlog2.f32 %v410_v22  ;;  %v2269_v5 = vld [vmem:[%s1464_s6 + $0x150] sm:$0xff]  ;;  %v2316_v44 = vld [vmem:[%s1464_s6 + $0x168] sm:$0xff] }
  0x93   : > { %v1170_v31 = vpop.eup %1169  ;;  %v612_v47 = vadd.f32 %v1521_v24, %v557_v15  ;;  %v494_v29 = vmul.f32 0.6931472, %v1168_v38  ;;  %v669_v49 = vmul.f32 %v1500_v16, %v408_v56  ;;  %v411_v42 = vsel %vm315_vm8, %v363_v36, 1.0 }
  0x94   : > { %864 = vst [vmem:[%s1664_s18 + $0x108] sm:$0xff] %v816_v43  ;;  %v769_v19 = vsel %vm309_vm2, %v714_v48, %v1502_v17  ;;  %v613_v51 = vadd.f32 %v1481_v8, %v558_v41  ;;  %v496_v30 = vmul.f32 0.6931472, %v1170_v31  ;;  %1173 = vlog2.f32 %v411_v42 }
  0x95   : > { %v817_v56 = vsub.f32 0.0, %v769_v19  ;;  %v715_v39 = vsub.f32 %v612_v47, %v667_v46  ;;  %v559_v28 = vmul.f32 %v1492_v13, %v494_v29  ;;  %v670_v52 = vmul.f32 %v1523_v25, %v409_v45  ;;  %v2340_v47 = vld [vmem:[%s1464_s6 + $0x170] sm:$0xff] }
  0x96   : > { %v716_v57 = vsub.f32 %v613_v51, %v668_v37  ;;  %v560_v59 = vmul.f32 %v1513_v21, %v496_v30  ;;  %vm316_vm9 = vcmp.gt.f32.partialorder %v2260_v27, %v1511_v20  ;;  %v364_v34 = vsub.f32 %v2260_v27, %v1511_v20 }
  0x97   : > { %865 = vst [vmem:[%s1664_s18 + $0x110] sm:$0xff] %v817_v56  ;;  %v770_v55 = vsel %vm310_vm3, %v715_v39, %v1525_v26  ;;  %v614_v46 = vadd.f32 %v1494_v14, %v559_v28  ;;  %vm317_vm10 = vcmp.gt.f32.partialorder %v2269_v5, %v1477_v6  ;;  %v365_v45 = vsub.f32 %v2269_v5, %v1477_v6  ;;  %v2352_v39 = vld [vmem:[%s1464_s6 + $0x178] sm:$0xff] }
  0x98   : > { %v1172_v3 = vpop.eup %1171  ;;  %v818_v63 = vsub.f32 0.0, %v770_v55  ;;  %v771_v10 = vsel %vm311_vm4, %v716_v57, %v1488_v11  ;;  %v615_v4 = vadd.f32 %v1521_v24, %v560_v59  ;;  %v412_v50 = vsel %vm316_vm9, %v364_v34, 1.0 }
  0x99   : > { %v819_v2 = vsub.f32 0.0, %v771_v10  ;;  %v717_v37 = vsub.f32 %v614_v46, %v669_v49  ;;  %v498_v1 = vmul.f32 0.6931472, %v1172_v3  ;;  %1175 = vlog2.f32 %v412_v50 }
  0x9a   : > { %v1174_v32 = vpop.eup %1173  ;;  %866 = vst [vmem:[%s1664_s18 + $0x118] sm:$0xff] %v818_v63  ;;  %v718_v53 = vsub.f32 %v615_v4, %v670_v52  ;;  %v671_v18 = vmul.f32 %v1483_v9, %v410_v22  ;;  %v413_v61 = vsel %vm317_vm10, %v365_v45, 1.0  ;;  %vm318_vm11 = vcmp.gt.f32.partialorder %v2289_v60, %v1490_v12 }
  0x9b   : > { %867 = vst [vmem:[%s1664_s18 + $0x120] sm:$0xff] %v819_v2  ;;  %v772_v0 = vsel %vm312_vm5, %v717_v37, %v1502_v17  ;;  %v561_v35 = vmul.f32 %v1479_v7, %v498_v1  ;;  %v500_v62 = vmul.f32 0.6931472, %v1174_v32  ;;  %1177 = vlog2.f32 %v413_v61 }
  0x9c   : > { %v820_v15 = vsub.f32 0.0, %v772_v0  ;;  %v773_v22 = vsel %vm313_vm6, %v718_v53, %v1525_v26  ;;  %v672_v36 = vmul.f32 %v1500_v16, %v411_v42  ;;  %v366_v58 = vsub.f32 %v2289_v60, %v1490_v12 }
  0x9d   : > { %v821_v38 = vsub.f32 0.0, %v773_v22  ;;  %v616_v43 = vadd.f32 %v1481_v8, %v561_v35  ;;  %v562_v48 = vmul.f32 %v1492_v13, %v500_v62  ;;  %vm319_vm12 = vcmp.gt.f32.partialorder %v2307_v33, %v1511_v20 }
  0x9e   : > { %868 = vst [vmem:[%s1664_s18 + $0x128] sm:$0xff] %v820_v15  ;;  %v414_v23 = vsel %vm318_vm11, %v366_v58, 1.0  ;;  %v367_v41 = vsub.f32 %v2307_v33, %v1511_v20  ;;  %vm320_vm13 = vcmp.gt.f32.partialorder %v2316_v44, %v1477_v6  ;;  %v368_v31 = vsub.f32 %v2316_v44, %v1477_v6 }
  0x9f   : > { %v1176_v29 = vpop.eup %1175  ;;  %869 = vst [vmem:[%s1664_s18 + $0x130] sm:$0xff] %v821_v38  ;;  %v719_v49 = vsub.f32 %v616_v43, %v671_v18  ;;  %v617_v42 = vadd.f32 %v1494_v14, %v562_v48  ;;  %1179 = vlog2.f32 %v414_v23  ;;  %v673_v51 = vmul.f32 %v1523_v25, %v412_v50 }
  0xa0   : > { %v502_v19 = vmul.f32 0.6931472, %v1176_v29  ;;  %v415_v30 = vsel %vm319_vm12, %v367_v41, 1.0  ;;  %v416_v56 = vsel %vm320_vm13, %v368_v31, 1.0  ;;  %vm321_vm14 = vcmp.gt.f32.partialorder %v2340_v47, %v1490_v12 }
  0xa1   : > { %v1178_v28 = vpop.eup %1177  ;;  %v774_v52 = vsel %vm314_vm7, %v719_v49, %v1488_v11  ;;  %v720_v57 = vsub.f32 %v617_v42, %v672_v36  ;;  %1181 = vlog2.f32 %v415_v30  ;;  %v674_v45 = vmul.f32 %v1483_v9, %v413_v61 }
  0xa2   : > { %v822_v59 = vsub.f32 0.0, %v774_v52  ;;  %v563_v34 = vmul.f32 %v1513_v21, %v502_v19  ;;  %v504_v55 = vmul.f32 0.6931472, %v1178_v28  ;;  %1183 = vlog2.f32 %v416_v56 }
  0xa3   : > { %v775_v46 = vsel %vm315_vm8, %v720_v57, %v1502_v17  ;;  %v369_v54 = vsub.f32 %v2340_v47, %v1490_v12  ;;  %vm322_vm15 = vcmp.gt.f32.partialorder %v2352_v39, %v1511_v20  ;;  %v370_v4 = vsub.f32 %v2352_v39, %v1511_v20 }
  0xa4   : > { %870 = vst [vmem:[%s1664_s18 + $0x138] sm:$0xff] %v822_v59  ;;  %v823_v3 = vsub.f32 0.0, %v775_v46  ;;  %v618_v63 = vadd.f32 %v1521_v24, %v563_v34  ;;  %v564_v10 = vmul.f32 %v1479_v7, %v504_v55  ;;  %v675_v53 = vmul.f32 %v1500_v16, %v414_v23 }
  0xa5   : > { %v1180_v50 = vpop.eup %1179  ;;  %v417_v40 = vsel %vm321_vm14, %v369_v54, 1.0  ;;  %v418_v18 = vsel %vm322_vm15, %v370_v4, 1.0  ;;  %v676_v27 = vmul.f32 %v1523_v25, %v415_v30  ;;  %v677_v41 = vmul.f32 %v1483_v9, %v416_v56 }
  0xa6   : > { %871 = vst [vmem:[%s1664_s18 + $0x140] sm:$0xff] %v823_v3  ;;  %v721_v2 = vsub.f32 %v618_v63, %v673_v51  ;;  %v619_v37 = vadd.f32 %v1481_v8, %v564_v10  ;;  %v506_v1 = vmul.f32 0.6931472, %v1180_v50  ;;  %1185 = vlog2.f32 %v417_v40 }
  0xa7   : > { %v1182_v32 = vpop.eup %1181  ;;  %1187 = vlog2.f32 %v418_v18  ;;  %v678_v28 = vmul.f32 %v1500_v16, %v417_v40  ;;  %v679_v34 = vmul.f32 %v1523_v25, %v418_v18 }
  0xa8   : > { %v1184_v61 = vpop.eup %1183  ;;  %v776_v0 = vsel %vm316_vm9, %v721_v2, %v1525_v26  ;;  %v722_v35 = vsub.f32 %v619_v37, %v674_v45  ;;  %v565_v62 = vmul.f32 %v1492_v13, %v506_v1  ;;  %v508_v15 = vmul.f32 0.6931472, %v1182_v32 }
  0xa9   : > { %v824_v22 = vsub.f32 0.0, %v776_v0  ;;  %v510_v36 = vmul.f32 0.6931472, %v1184_v61 }
  0xaa   : > { %v777_v58 = vsel %vm317_vm10, %v722_v35, %v1488_v11  ;;  %v620_v38 = vadd.f32 %v1494_v14, %v565_v62  ;;  %v566_v43 = vmul.f32 %v1513_v21, %v508_v15 }
  0xab   : > { %872 = vst [vmem:[%s1664_s18 + $0x148] sm:$0xff] %v824_v22  ;;  %v825_v48 = vsub.f32 0.0, %v777_v58  ;;  %v567_v23 = vmul.f32 %v1479_v7, %v510_v36 }
  0xac   : > { %v1186_v31 = vpop.eup %1185  ;;  %v723_v29 = vsub.f32 %v620_v38, %v675_v53  ;;  %v621_v49 = vadd.f32 %v1521_v24, %v566_v43 }
  0xad   : > { %873 = vst [vmem:[%s1664_s18 + $0x150] sm:$0xff] %v825_v48  ;;  %v622_v5 = vadd.f32 %v1481_v8, %v567_v23  ;;  %v512_v42 = vmul.f32 0.6931472, %v1186_v31  ;;  %v1188_v7 = vpop.eup %1187 }
  0xae   : > { %v778_v19 = vsel %vm318_vm11, %v723_v29, %v1502_v17  ;;  %v724_v51 = vsub.f32 %v621_v49, %v676_v27  ;;  %v514_v52 = vmul.f32 0.6931472, %v1188_v7 }
  0xaf   : > { %v826_v30 = vsub.f32 0.0, %v778_v19  ;;  %v725_v9 = vsub.f32 %v622_v5, %v677_v41  ;;  %v568_v56 = vmul.f32 %v1492_v13, %v512_v42 }
  0xb0   : > { %v779_v8 = vsel %vm319_vm12, %v724_v51, %v1525_v26  ;;  %v569_v16 = vmul.f32 %v1513_v21, %v514_v52 }
  0xb1   : > { %874 = vst [vmem:[%s1664_s18 + $0x158] sm:$0xff] %v826_v30  ;;  %v827_v60 = vsub.f32 0.0, %v779_v8  ;;  %v780_v57 = vsel %vm320_vm13, %v725_v9, %v1488_v11  ;;  %v623_v59 = vadd.f32 %v1494_v14, %v568_v56 }
  0xb2   : > { %v828_v13 = vsub.f32 0.0, %v780_v57  ;;  %v624_v6 = vadd.f32 %v1521_v24, %v569_v16 }
  0xb3   : > { %875 = vst [vmem:[%s1664_s18 + $0x160] sm:$0xff] %v827_v60  ;;  %v726_v33 = vsub.f32 %v623_v59, %v678_v28 }
  0xb4   : > { %876 = vst [vmem:[%s1664_s18 + $0x168] sm:$0xff] %v828_v13  ;;  %v727_v21 = vsub.f32 %v624_v6, %v679_v34 }
  0xb5   : > { %v781_v11 = vsel %vm321_vm14, %v726_v33, %v1502_v17 }
  0xb6   : > { %v829_v14 = vsub.f32 0.0, %v781_v11  ;;  %v782_v25 = vsel %vm322_vm15, %v727_v21, %v1525_v26 }
  0xb7   : > { %v830_v44 = vsub.f32 0.0, %v782_v25 }
  0xb8   : > { %877 = vst [vmem:[%s1664_s18 + $0x170] sm:$0xff] %v829_v14 }
  0xb9   : > { %878 = vst [vmem:[%s1664_s18 + $0x178] sm:$0xff] %v830_v44 }
  0xba   : > { %1276 = shalt.err (!%p1273_p1)
}
  0xbb   : > { %s1340_s5 = smov 384   ;;  %s1341_s17 = smov 24  }
  0xbc   : > { %1022 = dma.vmem_to_hbm [thread:$0]  (%p1409_p8), %s896_s3, 6144, %s898_s7, %s880_s8, %s1340_s5, %s1340_s5, %s1341_s17  }
  0xbd PF: > { %s912_s4 = sand.u32 1, %s1315_s9   ;;  %p1033_p2 = pnand %p1001_p13, %p1413_p9 }
  0xbe   : > { %s913_s6 = scalar_lea.sflag [#allocation4], %s912_s4 }
  0xbf   : > { %p1034_p4 = pneg %p1033_p2 }
  0xc1   : > { %1310 = dma.done.wait (%p1034_p4), %s913_s6, 6144  }
  0xc2   : > { %1312 = vsyncadd (%p1034_p4), %s913_s6, 4294961152  ;;  %s19_s14 = sadd.s32 1, %s1335_s14   ;;  %s2482_s9 = smov %s1319_s10 }
  0xc3   : > { %p16_p6 = scmp.ge.s32.totalorder %s19_s14, 4   ;;  %s2483_s10 = smov %s1323_s11 }
  0xc4   : > { %s2484_s11 = smov %s1451_s23  ;;  %s2485_s12 = smov %s1331_s13 }
  0xc5   : > { %s2486_s13 = smov %s2488_s30  ;;  %18 = sbr.rel (!%p16_p6) target bundleno = 7 (0x7), region = 82 }
  0xca   :  { %919 = vsyncpa [#allocation3], 1 }
  0xcb   :  { %921 = vsyncpa [#allocation3 + $0x1], 1 }
  0xcc   :  { %922 = vsyncpa [#allocation6], 1 }
  0xcd   :  { %923 = vsyncpa [#allocation4], 1 }
  0xce   :  { %925 = vsyncpa [#allocation4 + $0x1], 1 }

</bundles_post_ra>
